<compile_context>
chip_gen: v7x
topology: tpu7x:2x2x1
jax: 0.10.0
libtpu: 0.0.40
codegen_flags: <defaults>
</compile_context>

<pallas_src>
import functools

import numpy as np

import jax
import jax.numpy as jnp
from jax.experimental import pallas as pl
from jax.experimental.pallas import tpu as pltpu


def basic_block_kernel(x_ref, m_ref, w1_ref, b1_ref, w2_ref, b2_ref, out_ref,
                       *, W, L, tap_group, compute_dtype):
    """One grid step: a (C, L) lane-dense slab holding images_per_block images.

    x_ref   : (1, C, L) f32 activations, L = images_per_block*H*W padded to 128
    m_ref   : (9, 1, L) compute_dtype {0,1} halo/pad masks (host-built, resident)
    w*_ref  : BN-folded conv weights, (Cout, 9*Cin) or (3, Cout, 3*Cin)
    b*_ref  : (Cout, 1) f32 BN-folded bias
    out_ref : (1, Cout, L) f32
    """
    x_f32 = x_ref[0]                     # (C, L) float32, kept for the residual
    masks = m_ref[...]                   # (9, 1, L), loaded once per grid step

    def im2col_taps(a):
        # a: (Cin, L) in compute_dtype. 9 taps via XLU lane rotations; halo and
        # lane-pad handling is a single {0,1} multiply per non-centre tap.
        # (Cross-image wrap inside the packed slab is zeroed by the same masks.)
        taps = []
        t = 0
        for dy in (-1, 0, 1):
            for dx in (-1, 0, 1):
                if dy == 0 and dx == 0:
                    taps.append(a)       # centre tap is always in-image
                else:
                    shift = (-(dy * W + dx)) % L
                    taps.append(pltpu.roll(a, shift=shift, axis=1) * masks[t])
                t += 1
        return taps

    def conv_bn(a, w_ref, b_ref):
        taps = im2col_taps(a)
        if tap_group == 9:
            # One MXU matmul, K = 9*Cin (best for small Cin).
            slab = jnp.concatenate(taps, axis=0)
            acc = jnp.dot(w_ref[...], slab, preferred_element_type=jnp.float32)
        else:
            # 3 chained accumulating matmuls, K = 3*Cin: ~3x smaller im2col
            # scratch and MRB-friendly accumulation on v7x.
            acc = None
            for g in range(3):
                grp = jnp.concatenate(taps[3 * g:3 * (g + 1)], axis=0)
                part = jnp.dot(w_ref[g], grp, preferred_element_type=jnp.float32)
                acc = part if acc is None else acc + part
        return acc + b_ref[...]          # f32 epilogue (bias in f32)

    # conv1 * bn1 -> bias -> ReLU
    out1 = jnp.maximum(conv_bn(x_f32.astype(compute_dtype), w1_ref, b1_ref), 0.0)
    # conv2 * bn2 -> bias -> +identity -> ReLU
    acc2 = conv_bn(out1.astype(compute_dtype), w2_ref, b2_ref)
    out_ref[0] = jnp.maximum(acc2 + x_f32, 0.0)


def _pick_images_per_block(N, C, HW, act_budget_bytes=16 * 1024 * 1024):
    """Largest divisor of N whose lane-packed block fits a v7x-safe activation
    budget (~16 MiB of live activation data per step)."""
    per_lane = 46 * C            # rough bytes/lane: dbl-buffered f32 in/out,
    max_lanes = max(128, act_budget_bytes // per_lane)   # bf16 slab, f32 acc...
    best = 1
    for nb in range(1, N + 1):
        if N % nb == 0 and nb * HW <= max_lanes:
            best = nb
    return best


def _build_tap_masks(H, W, images_per_block, L_pad, dtype):
    """(9, 1, L_pad) {0,1} masks: tap (dy,dx) valid AND lane is a real pixel."""
    HW = H * W
    lane = np.arange(L_pad)
    in_img = lane < images_per_block * HW
    q = lane % HW
    py, px = q // W, q % W
    masks = np.zeros((9, 1, L_pad), np.float32)
    t = 0
    for dy in (-1, 0, 1):
        for dx in (-1, 0, 1):
            ok = (in_img & (py + dy >= 0) & (py + dy <= H - 1)
                  & (px + dx >= 0) & (px + dx <= W - 1))
            masks[t, 0, :] = ok.astype(np.float32)
            t += 1
    return jnp.asarray(masks, dtype=dtype)


def basic_block_forward(x_nchw, params, eps=1e-5, compute_dtype=jnp.bfloat16,
                        images_per_block=None, tap_group=None,
                        vmem_limit_bytes=32 * 1024 * 1024):
    """x_nchw: (N, C, H, W) float32 -> (N, C, H, W) float32.

    compute_dtype sets the MXU-operand / im2col precision (bf16 recommended on
    v6e/v7x; on v5e the {0,1} mask multiply is upcast by Mosaic but stays
    correct).  vmem_limit_bytes=32 MiB is v7x-safe; raise to 64-100 MiB on
    v5e/v6e for larger per-step blocks.
    """
    N, C, H, W = x_nchw.shape
    HW = H * W

    if images_per_block is None:
        images_per_block = _pick_images_per_block(N, C, HW)
    Nb = images_per_block
    assert N % Nb == 0, "images_per_block must divide N"
    if tap_group is None:
        tap_group = 9 if C <= 32 else 3      # single matmul only for tiny Cin
    assert tap_group in (3, 9)

    L = Nb * HW
    L_pad = -(-L // 128) * 128               # lane-dense (multiple of 128)

    # (N,C,H,W) -> (N/Nb, C, Nb*HW): images packed along the 128-lane axis,
    # zero lane padding at the end of each block (masks keep it out of compute).
    x = x_nchw.reshape(N, C, HW).astype(jnp.float32)
    xb = x.reshape(N // Nb, Nb, C, HW).transpose(0, 2, 1, 3).reshape(N // Nb, C, L)
    if L_pad > L:
        xb = jnp.pad(xb, ((0, 0), (0, 0), (0, L_pad - L)))

    masks = _build_tap_masks(H, W, Nb, L_pad, compute_dtype)

    def fold(w_oihw, gamma, beta, mean, var):
        # (Cout,Cin,3,3) -> (Cout, ky,kx,Cin) -> (Cout, 9*Cin); fold BN scale.
        cout = w_oihw.shape[0]
        s = gamma / jnp.sqrt(var + eps)
        wm = jnp.transpose(w_oihw, (0, 2, 3, 1)).reshape(cout, -1)
        wm = (wm * s[:, None]).astype(compute_dtype)
        if tap_group == 3:
            cin = wm.shape[1] // 9
            wm = wm.reshape(cout, 3, 3 * cin).transpose(1, 0, 2)  # (3,Cout,3*Cin)
        bias = (beta - mean * s).astype(jnp.float32)[:, None]     # (Cout, 1)
        return wm, bias

    w1m, b1 = fold(params["conv1_w"], params["bn1_gamma"], params["bn1_beta"],
                   params["bn1_mean"], params["bn1_var"])
    w2m, b2 = fold(params["conv2_w"], params["bn2_gamma"], params["bn2_beta"],
                   params["bn2_mean"], params["bn2_var"])
    Cout = params["conv1_w"].shape[0]
    assert Cout == C, "downsample=None requires inplanes == planes (stride=1)"

    def w_spec(shape):
        if tap_group == 3:
            return pl.BlockSpec(shape, lambda n: (0, 0, 0))
        return pl.BlockSpec(shape, lambda n: (0, 0))

    kernel = functools.partial(basic_block_kernel, W=W, L=L_pad,
                               tap_group=tap_group, compute_dtype=compute_dtype)

    out = pl.pallas_call(
        kernel,
        out_shape=jax.ShapeDtypeStruct((N // Nb, Cout, L_pad), jnp.float32),
        grid=(N // Nb,),
        in_specs=[
            pl.BlockSpec((1, C, L_pad), lambda n: (n, 0, 0)),     # activations
            pl.BlockSpec((9, 1, L_pad), lambda n: (0, 0, 0)),     # tap masks
            w_spec(w1m.shape),                                    # conv1*bn1 w
            pl.BlockSpec((Cout, 1), lambda n: (0, 0)),            # bn1 bias
            w_spec(w2m.shape),                                    # conv2*bn2 w
            pl.BlockSpec((Cout, 1), lambda n: (0, 0)),            # bn2 bias
        ],
        out_specs=pl.BlockSpec((1, Cout, L_pad), lambda n: (n, 0, 0)),
        compiler_params=pltpu.CompilerParams(
            dimension_semantics=("parallel",),      # megacore across blocks
            vmem_limit_bytes=vmem_limit_bytes),
    )(xb, masks, w1m, b1, w2m, b2)

    out = out[:, :, :L]                                           # drop lane pad
    out = out.reshape(N // Nb, Cout, Nb, HW).transpose(0, 2, 1, 3)
    return out.reshape(N, Cout, H, W)


def reference_forward(x, p, eps=1e-5):
    """Pure-JAX reference (NCHW, matches PyTorch eval-mode BasicBlock)."""
    def conv(x, w):
        return jax.lax.conv_general_dilated(
            x, w, window_strides=(1, 1), padding=((1, 1), (1, 1)),
            dimension_numbers=("NCHW", "OIHW", "NCHW"))

    def bn(x, g, b, m, v):
        c = (None, slice(None), None, None)
        return (x - m[c]) / jnp.sqrt(v[c] + eps) * g[c] + b[c]

    out = jax.nn.relu(bn(conv(x, p["conv1_w"]), p["bn1_gamma"], p["bn1_beta"],
                         p["bn1_mean"], p["bn1_var"]))
    out = bn(conv(out, p["conv2_w"]), p["bn2_gamma"], p["bn2_beta"],
             p["bn2_mean"], p["bn2_var"])
    return jax.nn.relu(out + x)


if __name__ == "__main__":
    N, C, H, W = 2, 8, 16, 16          # inplanes = planes = 8, stride = 1
    key = jax.random.PRNGKey(0)
    ks = jax.random.split(key, 9)

    x = jax.random.normal(ks[0], (N, C, H, W), jnp.float32)

    params = {
        "conv1_w": 0.1 * jax.random.normal(ks[1], (C, C, 3, 3), jnp.float32),
        "conv2_w": 0.1 * jax.random.normal(ks[2], (C, C, 3, 3), jnp.float32),
        "bn1_gamma": 1.0 + 0.1 * jax.random.normal(ks[3], (C,), jnp.float32),
        "bn1_beta": 0.1 * jax.random.normal(ks[4], (C,), jnp.float32),
        "bn1_mean": 0.05 * jax.random.normal(ks[5], (C,), jnp.float32),
        "bn1_var": 1.0 + 0.1 * jax.nn.sigmoid(jax.random.normal(ks[6], (C,), jnp.float32)),
        "bn2_gamma": 1.0 + 0.1 * jax.random.normal(ks[7], (C,), jnp.float32),
        "bn2_beta": 0.1 * jax.random.normal(ks[8], (C,), jnp.float32),
        "bn2_mean": jnp.zeros((C,), jnp.float32),
        "bn2_var": jnp.ones((C,), jnp.float32),
    }

    ref = jax.block_until_ready(reference_forward(x, params))

    # 1) Strict check, f32 MXU operands, default lane-batching (2 imgs/block).
    out_f32 = jax.block_until_ready(
        basic_block_forward(x, params, compute_dtype=jnp.float32))
    assert out_f32.shape == (N, C, H, W)
    assert jnp.max(jnp.abs(out_f32 - ref)) < 1e-4, "f32 kernel mismatch vs reference"

    # 2) Strict check of the grouped-matmul + multi-grid-step path.
    out_grp = jax.block_until_ready(
        basic_block_forward(x, params, compute_dtype=jnp.float32,
                            images_per_block=1, tap_group=3))
    assert jnp.max(jnp.abs(out_grp - ref)) < 1e-4, "grouped kernel mismatch vs reference"

    # 3) Default path: bf16 MXU operands / bf16 im2col, f32 accumulate+epilogue.
    #    (out1 is quantized to bf16 before conv2 — documented mixed precision.)
    out_bf16 = jax.block_until_ready(basic_block_forward(x, params))
    assert out_bf16.shape == (N, C, H, W)
    assert jnp.max(jnp.abs(out_bf16 - ref)) < 1e-1, "bf16 kernel mismatch vs reference"

    print("KERNEL_OK")
</pallas_src>

<mosaic_0001>
module attributes {stable_mosaic.version = 11 : i64} {
  func.func @basic_block_kernel(%arg0: i32, %arg1: memref<1x8x512xf32, #tpu.memory_space<vmem>>, %arg2: memref<9x1x512xf32, #tpu.memory_space<vmem>>, %arg3: memref<8x72xf32, #tpu.memory_space<vmem>>, %arg4: memref<8x1xf32, #tpu.memory_space<vmem>>, %arg5: memref<8x72xf32, #tpu.memory_space<vmem>>, %arg6: memref<8x1xf32, #tpu.memory_space<vmem>>, %arg7: memref<1x8x512xf32, #tpu.memory_space<vmem>>) attributes {dimension_semantics = [#tpu.dimension_semantics<parallel>], iteration_bounds = array<i64: 1>, scalar_prefetch = 0 : i64, scratch_operands = 0 : i64, tpu.core_type = #tpu.core_type<tc>, window_params = [{transform_indices = @transform_0, window_bounds = array<i64: 1, 8, 512>}, {pipeline_mode = #tpu.pipeline_mode<synchronous>, transform_indices = @transform_1, window_bounds = array<i64: 9, 1, 512>}, {pipeline_mode = #tpu.pipeline_mode<synchronous>, transform_indices = @transform_2, window_bounds = array<i64: 8, 72>}, {pipeline_mode = #tpu.pipeline_mode<synchronous>, transform_indices = @transform_3, window_bounds = array<i64: 8, 1>}, {pipeline_mode = #tpu.pipeline_mode<synchronous>, transform_indices = @transform_4, window_bounds = array<i64: 8, 72>}, {pipeline_mode = #tpu.pipeline_mode<synchronous>, transform_indices = @transform_5, window_bounds = array<i64: 8, 1>}, {transform_indices = @transform_6, window_bounds = array<i64: 1, 8, 512>}]} {
    %c0 = arith.constant 0 : index
    %c0_0 = arith.constant 0 : index
    %c0_1 = arith.constant 0 : index
    %0 = vector.load %arg1[%c0, %c0_0, %c0_1] : memref<1x8x512xf32, #tpu.memory_space<vmem>>, vector<1x8x512xf32>
    %1 = vector.shape_cast %0 : vector<1x8x512xf32> to vector<8x512xf32>
    %c0_2 = arith.constant 0 : index
    %c0_3 = arith.constant 0 : index
    %c0_4 = arith.constant 0 : index
    %2 = vector.load %arg2[%c0_2, %c0_3, %c0_4] : memref<9x1x512xf32, #tpu.memory_space<vmem>>, vector<9x1x512xf32>
    %c17_i32 = arith.constant 17 : i32
    %3 = tpu.dynamic_rotate %1 by %c17_i32 dim 1 : vector<8x512xf32>, i32 -> vector<8x512xf32>
    %4 = vector.extract_strided_slice %2 {offsets = [0, 0, 0], sizes = [1, 1, 512], strides = [1, 1, 1]} : vector<9x1x512xf32> to vector<1x1x512xf32>
    %5 = vector.shape_cast %4 : vector<1x1x512xf32> to vector<1x512xf32>
    %6 = vector.broadcast %5 : vector<1x512xf32> to vector<8x512xf32>
    %7 = arith.mulf %3, %6 : vector<8x512xf32>
    %c16_i32 = arith.constant 16 : i32
    %8 = tpu.dynamic_rotate %1 by %c16_i32 dim 1 : vector<8x512xf32>, i32 -> vector<8x512xf32>
    %9 = vector.extract_strided_slice %2 {offsets = [1, 0, 0], sizes = [1, 1, 512], strides = [1, 1, 1]} : vector<9x1x512xf32> to vector<1x1x512xf32>
    %10 = vector.shape_cast %9 : vector<1x1x512xf32> to vector<1x512xf32>
    %11 = vector.broadcast %10 : vector<1x512xf32> to vector<8x512xf32>
    %12 = arith.mulf %8, %11 : vector<8x512xf32>
    %c15_i32 = arith.constant 15 : i32
    %13 = tpu.dynamic_rotate %1 by %c15_i32 dim 1 : vector<8x512xf32>, i32 -> vector<8x512xf32>
    %14 = vector.extract_strided_slice %2 {offsets = [2, 0, 0], sizes = [1, 1, 512], strides = [1, 1, 1]} : vector<9x1x512xf32> to vector<1x1x512xf32>
    %15 = vector.shape_cast %14 : vector<1x1x512xf32> to vector<1x512xf32>
    %16 = vector.broadcast %15 : vector<1x512xf32> to vector<8x512xf32>
    %17 = arith.mulf %13, %16 : vector<8x512xf32>
    %c1_i32 = arith.constant 1 : i32
    %18 = tpu.dynamic_rotate %1 by %c1_i32 dim 1 : vector<8x512xf32>, i32 -> vector<8x512xf32>
    %19 = vector.extract_strided_slice %2 {offsets = [3, 0, 0], sizes = [1, 1, 512], strides = [1, 1, 1]} : vector<9x1x512xf32> to vector<1x1x512xf32>
    %20 = vector.shape_cast %19 : vector<1x1x512xf32> to vector<1x512xf32>
    %21 = vector.broadcast %20 : vector<1x512xf32> to vector<8x512xf32>
    %22 = arith.mulf %18, %21 : vector<8x512xf32>
    %c511_i32 = arith.constant 511 : i32
    %23 = tpu.dynamic_rotate %1 by %c511_i32 dim 1 : vector<8x512xf32>, i32 -> vector<8x512xf32>
    %24 = vector.extract_strided_slice %2 {offsets = [5, 0, 0], sizes = [1, 1, 512], strides = [1, 1, 1]} : vector<9x1x512xf32> to vector<1x1x512xf32>
    %25 = vector.shape_cast %24 : vector<1x1x512xf32> to vector<1x512xf32>
    %26 = vector.broadcast %25 : vector<1x512xf32> to vector<8x512xf32>
    %27 = arith.mulf %23, %26 : vector<8x512xf32>
    %c497_i32 = arith.constant 497 : i32
    %28 = tpu.dynamic_rotate %1 by %c497_i32 dim 1 : vector<8x512xf32>, i32 -> vector<8x512xf32>
    %29 = vector.extract_strided_slice %2 {offsets = [6, 0, 0], sizes = [1, 1, 512], strides = [1, 1, 1]} : vector<9x1x512xf32> to vector<1x1x512xf32>
    %30 = vector.shape_cast %29 : vector<1x1x512xf32> to vector<1x512xf32>
    %31 = vector.broadcast %30 : vector<1x512xf32> to vector<8x512xf32>
    %32 = arith.mulf %28, %31 : vector<8x512xf32>
    %c496_i32 = arith.constant 496 : i32
    %33 = tpu.dynamic_rotate %1 by %c496_i32 dim 1 : vector<8x512xf32>, i32 -> vector<8x512xf32>
    %34 = vector.extract_strided_slice %2 {offsets = [7, 0, 0], sizes = [1, 1, 512], strides = [1, 1, 1]} : vector<9x1x512xf32> to vector<1x1x512xf32>
    %35 = vector.shape_cast %34 : vector<1x1x512xf32> to vector<1x512xf32>
    %36 = vector.broadcast %35 : vector<1x512xf32> to vector<8x512xf32>
    %37 = arith.mulf %33, %36 : vector<8x512xf32>
    %c495_i32 = arith.constant 495 : i32
    %38 = tpu.dynamic_rotate %1 by %c495_i32 dim 1 : vector<8x512xf32>, i32 -> vector<8x512xf32>
    %39 = vector.extract_strided_slice %2 {offsets = [8, 0, 0], sizes = [1, 1, 512], strides = [1, 1, 1]} : vector<9x1x512xf32> to vector<1x1x512xf32>
    %40 = vector.shape_cast %39 : vector<1x1x512xf32> to vector<1x512xf32>
    %41 = vector.broadcast %40 : vector<1x512xf32> to vector<8x512xf32>
    %42 = arith.mulf %38, %41 : vector<8x512xf32>
    %43 = tpu.concatenate %7, %12, %17, %22, %1, %27, %32, %37, %42 in 0 : vector<8x512xf32>, vector<8x512xf32>, vector<8x512xf32>, vector<8x512xf32>, vector<8x512xf32>, vector<8x512xf32>, vector<8x512xf32>, vector<8x512xf32>, vector<8x512xf32> -> vector<72x512xf32>
    %c0_5 = arith.constant 0 : index
    %c0_6 = arith.constant 0 : index
    %44 = vector.load %arg3[%c0_5, %c0_6] : memref<8x72xf32, #tpu.memory_space<vmem>>, vector<8x72xf32>
    %cst = arith.constant dense<0.000000e+00> : vector<8x512xf32>
    %45 = tpu.matmul %44, %43, %cst {dimension_numbers = #tpu.dot_dimension_numbers<[1], [0], [0], [1], [0, 0, 1, 1], [], []>} : vector<8x72xf32>, vector<72x512xf32>, vector<8x512xf32> -> vector<8x512xf32>
    %c0_7 = arith.constant 0 : index
    %c0_8 = arith.constant 0 : index
    %46 = vector.load %arg4[%c0_7, %c0_8] : memref<8x1xf32, #tpu.memory_space<vmem>>, vector<8x1xf32>
    %47 = vector.broadcast %46 : vector<8x1xf32> to vector<8x512xf32>
    %48 = arith.addf %45, %47 : vector<8x512xf32>
    %cst_9 = arith.constant 0.000000e+00 : f32
    %49 = vector.broadcast %cst_9 : f32 to vector<8x512xf32>
    %50 = arith.maximumf %48, %49 : vector<8x512xf32>
    %c17_i32_10 = arith.constant 17 : i32
    %51 = tpu.dynamic_rotate %50 by %c17_i32_10 dim 1 : vector<8x512xf32>, i32 -> vector<8x512xf32>
    %52 = vector.extract_strided_slice %2 {offsets = [0, 0, 0], sizes = [1, 1, 512], strides = [1, 1, 1]} : vector<9x1x512xf32> to vector<1x1x512xf32>
    %53 = vector.shape_cast %52 : vector<1x1x512xf32> to vector<1x512xf32>
    %54 = vector.broadcast %53 : vector<1x512xf32> to vector<8x512xf32>
    %55 = arith.mulf %51, %54 : vector<8x512xf32>
    %c16_i32_11 = arith.constant 16 : i32
    %56 = tpu.dynamic_rotate %50 by %c16_i32_11 dim 1 : vector<8x512xf32>, i32 -> vector<8x512xf32>
    %57 = vector.extract_strided_slice %2 {offsets = [1, 0, 0], sizes = [1, 1, 512], strides = [1, 1, 1]} : vector<9x1x512xf32> to vector<1x1x512xf32>
    %58 = vector.shape_cast %57 : vector<1x1x512xf32> to vector<1x512xf32>
    %59 = vector.broadcast %58 : vector<1x512xf32> to vector<8x512xf32>
    %60 = arith.mulf %56, %59 : vector<8x512xf32>
    %c15_i32_12 = arith.constant 15 : i32
    %61 = tpu.dynamic_rotate %50 by %c15_i32_12 dim 1 : vector<8x512xf32>, i32 -> vector<8x512xf32>
    %62 = vector.extract_strided_slice %2 {offsets = [2, 0, 0], sizes = [1, 1, 512], strides = [1, 1, 1]} : vector<9x1x512xf32> to vector<1x1x512xf32>
    %63 = vector.shape_cast %62 : vector<1x1x512xf32> to vector<1x512xf32>
    %64 = vector.broadcast %63 : vector<1x512xf32> to vector<8x512xf32>
    %65 = arith.mulf %61, %64 : vector<8x512xf32>
    %c1_i32_13 = arith.constant 1 : i32
    %66 = tpu.dynamic_rotate %50 by %c1_i32_13 dim 1 : vector<8x512xf32>, i32 -> vector<8x512xf32>
    %67 = vector.extract_strided_slice %2 {offsets = [3, 0, 0], sizes = [1, 1, 512], strides = [1, 1, 1]} : vector<9x1x512xf32> to vector<1x1x512xf32>
    %68 = vector.shape_cast %67 : vector<1x1x512xf32> to vector<1x512xf32>
    %69 = vector.broadcast %68 : vector<1x512xf32> to vector<8x512xf32>
    %70 = arith.mulf %66, %69 : vector<8x512xf32>
    %c511_i32_14 = arith.constant 511 : i32
    %71 = tpu.dynamic_rotate %50 by %c511_i32_14 dim 1 : vector<8x512xf32>, i32 -> vector<8x512xf32>
    %72 = vector.extract_strided_slice %2 {offsets = [5, 0, 0], sizes = [1, 1, 512], strides = [1, 1, 1]} : vector<9x1x512xf32> to vector<1x1x512xf32>
    %73 = vector.shape_cast %72 : vector<1x1x512xf32> to vector<1x512xf32>
    %74 = vector.broadcast %73 : vector<1x512xf32> to vector<8x512xf32>
    %75 = arith.mulf %71, %74 : vector<8x512xf32>
    %c497_i32_15 = arith.constant 497 : i32
    %76 = tpu.dynamic_rotate %50 by %c497_i32_15 dim 1 : vector<8x512xf32>, i32 -> vector<8x512xf32>
    %77 = vector.extract_strided_slice %2 {offsets = [6, 0, 0], sizes = [1, 1, 512], strides = [1, 1, 1]} : vector<9x1x512xf32> to vector<1x1x512xf32>
    %78 = vector.shape_cast %77 : vector<1x1x512xf32> to vector<1x512xf32>
    %79 = vector.broadcast %78 : vector<1x512xf32> to vector<8x512xf32>
    %80 = arith.mulf %76, %79 : vector<8x512xf32>
    %c496_i32_16 = arith.constant 496 : i32
    %81 = tpu.dynamic_rotate %50 by %c496_i32_16 dim 1 : vector<8x512xf32>, i32 -> vector<8x512xf32>
    %82 = vector.extract_strided_slice %2 {offsets = [7, 0, 0], sizes = [1, 1, 512], strides = [1, 1, 1]} : vector<9x1x512xf32> to vector<1x1x512xf32>
    %83 = vector.shape_cast %82 : vector<1x1x512xf32> to vector<1x512xf32>
    %84 = vector.broadcast %83 : vector<1x512xf32> to vector<8x512xf32>
    %85 = arith.mulf %81, %84 : vector<8x512xf32>
    %c495_i32_17 = arith.constant 495 : i32
    %86 = tpu.dynamic_rotate %50 by %c495_i32_17 dim 1 : vector<8x512xf32>, i32 -> vector<8x512xf32>
    %87 = vector.extract_strided_slice %2 {offsets = [8, 0, 0], sizes = [1, 1, 512], strides = [1, 1, 1]} : vector<9x1x512xf32> to vector<1x1x512xf32>
    %88 = vector.shape_cast %87 : vector<1x1x512xf32> to vector<1x512xf32>
    %89 = vector.broadcast %88 : vector<1x512xf32> to vector<8x512xf32>
    %90 = arith.mulf %86, %89 : vector<8x512xf32>
    %91 = tpu.concatenate %55, %60, %65, %70, %50, %75, %80, %85, %90 in 0 : vector<8x512xf32>, vector<8x512xf32>, vector<8x512xf32>, vector<8x512xf32>, vector<8x512xf32>, vector<8x512xf32>, vector<8x512xf32>, vector<8x512xf32>, vector<8x512xf32> -> vector<72x512xf32>
    %c0_18 = arith.constant 0 : index
    %c0_19 = arith.constant 0 : index
    %92 = vector.load %arg5[%c0_18, %c0_19] : memref<8x72xf32, #tpu.memory_space<vmem>>, vector<8x72xf32>
    %cst_20 = arith.constant dense<0.000000e+00> : vector<8x512xf32>
    %93 = tpu.matmul %92, %91, %cst_20 {dimension_numbers = #tpu.dot_dimension_numbers<[1], [0], [0], [1], [0, 0, 1, 1], [], []>} : vector<8x72xf32>, vector<72x512xf32>, vector<8x512xf32> -> vector<8x512xf32>
    %c0_21 = arith.constant 0 : index
    %c0_22 = arith.constant 0 : index
    %94 = vector.load %arg6[%c0_21, %c0_22] : memref<8x1xf32, #tpu.memory_space<vmem>>, vector<8x1xf32>
    %95 = vector.broadcast %94 : vector<8x1xf32> to vector<8x512xf32>
    %96 = arith.addf %93, %95 : vector<8x512xf32>
    %97 = arith.addf %96, %1 : vector<8x512xf32>
    %cst_23 = arith.constant 0.000000e+00 : f32
    %98 = vector.broadcast %cst_23 : f32 to vector<8x512xf32>
    %99 = arith.maximumf %97, %98 : vector<8x512xf32>
    %c0_24 = arith.constant 0 : index
    %c0_25 = arith.constant 0 : index
    %c0_26 = arith.constant 0 : index
    %100 = vector.load %arg7[%c0_24, %c0_25, %c0_26] : memref<1x8x512xf32, #tpu.memory_space<vmem>>, vector<1x8x512xf32>
    %101 = vector.shape_cast %100 : vector<1x8x512xf32> to vector<8x512xf32>
    %102 = vector.shape_cast %99 : vector<8x512xf32> to vector<1x8x512xf32>
    tpu.vector_store %arg7[%c0_24, %c0_25, %c0_26], %102 {strides = array<i32>} : memref<1x8x512xf32, #tpu.memory_space<vmem>>, vector<1x8x512xf32>,
    return
  }
  func.func @transform_0(%arg0: i32) -> (i32, i32, i32) {
    %c0_i32 = arith.constant 0 : i32
    %c0_i32_0 = arith.constant 0 : i32
    %c0_i32_1 = arith.constant 0 : i32
    return %arg0, %c0_i32, %c0_i32_0 : i32, i32, i32
  }
  func.func @transform_1(%arg0: i32) -> (i32, i32, i32) {
    %c0_i32 = arith.constant 0 : i32
    %c0_i32_0 = arith.constant 0 : i32
    %c0_i32_1 = arith.constant 0 : i32
    %c0_i32_2 = arith.constant 0 : i32
    return %c0_i32, %c0_i32_0, %c0_i32_1 : i32, i32, i32
  }
  func.func @transform_2(%arg0: i32) -> (i32, i32) {
    %c0_i32 = arith.constant 0 : i32
    %c0_i32_0 = arith.constant 0 : i32
    %c0_i32_1 = arith.constant 0 : i32
    return %c0_i32, %c0_i32_0 : i32, i32
  }
  func.func @transform_3(%arg0: i32) -> (i32, i32) {
    %c0_i32 = arith.constant 0 : i32
    %c0_i32_0 = arith.constant 0 : i32
    %c0_i32_1 = arith.constant 0 : i32
    return %c0_i32, %c0_i32_0 : i32, i32
  }
  func.func @transform_4(%arg0: i32) -> (i32, i32) {
    %c0_i32 = arith.constant 0 : i32
    %c0_i32_0 = arith.constant 0 : i32
    %c0_i32_1 = arith.constant 0 : i32
    return %c0_i32, %c0_i32_0 : i32, i32
  }
  func.func @transform_5(%arg0: i32) -> (i32, i32) {
    %c0_i32 = arith.constant 0 : i32
    %c0_i32_0 = arith.constant 0 : i32
    %c0_i32_1 = arith.constant 0 : i32
    return %c0_i32, %c0_i32_0 : i32, i32
  }
  func.func @transform_6(%arg0: i32) -> (i32, i32, i32) {
    %c0_i32 = arith.constant 0 : i32
    %c0_i32_0 = arith.constant 0 : i32
    %c0_i32_1 = arith.constant 0 : i32
    return %arg0, %c0_i32, %c0_i32_0 : i32, i32, i32
  }
}

</mosaic_0001>

<bundles_post_ra>
// kernel: tpu_custom_call.1
= control target key start
LH: loop header
LB: loop body
LE: loop exit
PB: predicated region body
PF: predicated region fallthrough
CT: control target
= control target key end

     0   :  { %11 = vsyncpa [#allocation3], 0  ;;  %s1564_s0 = inlined_call_operand.hbm [shape: f32[1,8,512], index: 0, kind: input, shape index: {}]   ;;  %s1565_s1 = inlined_call_operand.hbm [shape: f32[9,1,512], index: 1, kind: input, shape index: {}]   ;;  %s1566_s2 = inlined_call_operand.vmem [shape: f32[8,72], index: 2, kind: input, shape index: {}]   ;;  %s1567_s3 = inlined_call_operand.vmem [shape: f32[8,1], index: 3, kind: input, shape index: {}]   ;;  %s1568_s4 = inlined_call_operand.vmem [shape: f32[8,72], index: 4, kind: input, shape index: {}]   ;;  %s1569_s5 = inlined_call_operand.vmem [shape: f32[8,1], index: 5, kind: input, shape index: {}]   ;;  %s1570_s6 = inlined_call_operand.hbm [shape: f32[1,8,512], index: 6, kind: output, shape index: {}]  }
   0x1   :  { %12 = vsyncpa [#allocation6], 0 }
   0x2   :  { %13 = vsyncpa [#allocation4], 0  ;;  %s989_s21 = smov [#allocation2]   ;;  %s990_s23 = smov [#allocation5]  }
   0x3   :  { %s20_s22 = sshll.u32 %s989_s21, 4  ;;  %s29_s24 = sshll.u32 %s990_s23, 4  ;;  %s21_s22 = int_to_ptr.vmem [resolvable:$true] %s20_s22  ;;  %s1039_s24 = int_to_ptr.vmem [resolvable:$true] %s29_s24 }
   0x4   :  { %s917_s27 = scalar_lea.hbm %s1564_s0, 512 }
   0x5   :  { %p918_p0 = scmp.ne.s32.totalorder %s1564_s0, %s917_s27  ;;  %p921_p1 = scmp.lt.u32.totalorder %s917_s27, %s1564_s0 }
   0x7   :  { %p923_p2 = pnand %p921_p1, %p918_p0 }
   0x9   :  { %926 = shalt.err (!%p923_p2)
}
   0xa   :  { %s927_s8 = scalar_lea.vmem %s21_s22, 512  ;;  %p932_p4 = scmp.lt.s32.totalorder %s21_s22, %s21_s22 }
   0xb   :  { %p928_p3 = scmp.ne.s32.totalorder %s21_s22, %s927_s8  ;;  %p933_p5 = scmp.lt.s32.totalorder %s927_s8, %s927_s8 }
   0xd   :  { %p934_p6 = por %p933_p5, %p932_p4 }
   0xf   :  { %p935_p7 = pnand %p934_p6, %p928_p3 }
  0x11   :  { %938 = shalt.err (!%p935_p7)
}
  0x12   :  { %23 = dma.hbm_to_vmem [thread:$0]  %s1564_s0, 512, %s21_s22, [#allocation3]  }
  0x13   :  { %s939_s13 = scalar_lea.hbm %s1565_s1, 576 }
  0x14   :  { %p940_p8 = scmp.ne.s32.totalorder %s1565_s1, %s939_s13  ;;  %p943_p9 = scmp.lt.u32.totalorder %s939_s13, %s1565_s1 }
  0x16   :  { %p945_p10 = pnand %p943_p9, %p940_p8 }
  0x18   :  { %948 = shalt.err (!%p945_p10)
}
  0x19   :  { %s949_s18 = scalar_lea.vmem %s1039_s24, 576  ;;  %p954_p12 = scmp.lt.s32.totalorder %s1039_s24, %s1039_s24 }
  0x1a   :  { %p950_p11 = scmp.ne.s32.totalorder %s1039_s24, %s949_s18  ;;  %p955_p13 = scmp.lt.s32.totalorder %s949_s18, %s949_s18 }
  0x1c   :  { %p956_p0 = por %p955_p13, %p954_p12 }
  0x1e   :  { %p957_p1 = pnand %p956_p0, %p950_p11 }
  0x20   :  { %960 = shalt.err (!%p957_p1)
}
  0x21   :  { %s991_s0 = smov 64   ;;  %s992_s19 = smov 4  }
  0x22   :  { %35 = dma.hbm_to_vmem [thread:$0]  %s1565_s1, 576, %s1039_s24, [#allocation6], %s991_s0, %s991_s0, %s992_s19  }
  0x23   :  { %983 = dma.done.wait [#allocation3], 512  }
  0x24   :  { %984 = vsyncadd [#allocation3], 4294966784 }
  0x25   :  { %985 = dma.done.wait [#allocation6], 576  }
  0x26   :  { %986 = vsyncadd [#allocation6], 4294966720  ;;  %v1070_v0 = vld [vmem:[#allocation2 + $0x10] sm:$0xff]  ;;  %v1072_v1 = vld [vmem:[#allocation2] sm:$0xff]  ;;  %s993_s22 = smov 17   ;;  %s994_s1 = smov 16   ;;  %v70_v7 = vlaneseq }
  0x27   :  { %66 = vrot.lane.b32.xlu1 %v1070_v0, %s993_s22  ;;  %62 = vrot.lane.b32.xlu0 %v1072_v1, %s993_s22  ;;  %v1078_v2 = vld [vmem:[#allocation2 + $0x18] sm:$0xff]  ;;  %v1080_v3 = vld [vmem:[#allocation2 + $0x8] sm:$0xff]  ;;  %s995_s23 = smov 15   ;;  %s996_s24 = smov 1   ;;  %v1000_v4 = vmov 0.0   ;;  %v1001_v5 = vmov 0  }
  0x28   :  { %s997_s25 = smov 127   ;;  %s998_s26 = smov 113   ;;  %443 = vmatprep.mubr.f32.mxu0 %v1000_v4  ;;  %514 = vmatprep.mubr.f32.mxu1 %v1000_v4  ;;  %v369_v6 = vld [vmem:[%s1567_s3] sm:$0xff]  ;;  %v79_v8 = vshrl.u32 %v70_v7, 7  ;;  %v1147_v11 = vand.u32 127, %v70_v7  ;;  %vm375_vm8 = vcmask 588800  }
  0x29   :  { %s999_s27 = smov 112   ;;  %916 = vset.pattern.permute.xlu0 %v1001_v5  ;;  %s1002_s28 = smov 111   ;;  %v54_v13 = vld [vmem:[#allocation5] sm:$0xf]  ;;  %v55_v14 = vld [vmem:[#allocation5 + $0x4] sm:$0xf] }
  0x2a   :  { %v1149_v12 = vsub.s32 1, %v79_v8  ;;  %vm72_vm0 = vcmp.lt.s32.totalorder %v1147_v11, 17  ;;  %v1152_v15 = vsub.s32 0, %v79_v8  ;;  %v1154_v17 = vsub.s32 2, %v79_v8  ;;  %v56_v54 = vld [vmem:[#allocation5 + $0x8] sm:$0xf] }
  0x2b   :  { %68 = vrot.lane.b32.xlu1 %v1078_v2, %s993_s22  ;;  %64 = vrot.lane.b32.xlu0 %v1080_v3, %s993_s22  ;;  %v1156_v19 = vsub.s32 3, %v79_v8  ;;  %vm110_vm1 = vcmp.lt.s32.totalorder %v1147_v11, 16  ;;  %v57_v55 = vld [vmem:[#allocation5 + $0xc] sm:$0xf]  ;;  %vm148_vm2 = vcmp.lt.s32.totalorder %v1147_v11, 15  ;;  %vm186_vm3 = vcmp.lt.s32.totalorder %v1147_v11, 1 }
  0x2c   :  { %v1160_v20 = vrot.slane %v54_v13, %v1149_v12  ;;  %v1163_v21 = vrot.slane %v55_v14, %v1149_v12  ;;  %v1168_v23 = vrot.slane %v54_v13, %v1152_v15  ;;  %v1171_v24 = vrot.slane %v54_v13, %v1154_v17 }
  0x2d   :  { %v1174_v27 = vrot.slane %v55_v14, %v1152_v15  ;;  %v1181_v30 = vrot.slane %v55_v14, %v1154_v17  ;;  %v1184_v31 = vrot.slane %v54_v13, %v1156_v19  ;;  %v1191_v35 = vrot.slane %v55_v14, %v1156_v19 }
  0x2e   :  { %v1209_v58 = vrot.slane %v56_v54, %v1149_v12  ;;  %v1213_v59 = vrot.slane %v57_v55, %v1149_v12  ;;  %v1218_v61 = vrot.slane %v56_v54, %v1152_v15  ;;  %v1221_v62 = vrot.slane %v56_v54, %v1154_v17 }
  0x2f   :  { %104 = vrot.lane.b32.xlu1 %v1080_v3, %s994_s1  ;;  %102 = vrot.lane.b32.xlu0 %v1072_v1, %s994_s1  ;;  %v1224_v63 = vrot.slane %v56_v54, %v1156_v19  ;;  %vm224_vm4 = vcmp.lt.s32.totalorder %v1147_v11, 127  ;;  %vm300_vm5 = vcmp.lt.s32.totalorder %v1147_v11, 112  ;;  %vm262_vm6 = vcmp.lt.s32.totalorder %v1147_v11, 113 }
  0x30   :  { %vm338_vm7 = vcmp.lt.s32.totalorder %v1147_v11, 111 }
  0x33   :  { %108 = vrot.lane.b32.xlu1 %v1078_v2, %s994_s1  ;;  %106 = vrot.lane.b32.xlu0 %v1070_v0, %s994_s1 }
  0x37   :  { %142 = vrot.lane.b32.xlu1 %v1080_v3, %s995_s23  ;;  %140 = vrot.lane.b32.xlu0 %v1072_v1, %s995_s23 }
  0x3b   :  { %146 = vrot.lane.b32.xlu1 %v1078_v2, %s995_s23  ;;  %144 = vrot.lane.b32.xlu0 %v1070_v0, %s995_s23 }
  0x3f   :  { %180 = vrot.lane.b32.xlu1 %v1080_v3, %s996_s24  ;;  %178 = vrot.lane.b32.xlu0 %v1072_v1, %s996_s24 }
  0x43   :  { %184 = vrot.lane.b32.xlu1 %v1078_v2, %s996_s24  ;;  %182 = vrot.lane.b32.xlu0 %v1070_v0, %s996_s24 }
  0x47   :  { %218 = vrot.lane.b32.xlu1 %v1080_v3, %s997_s25  ;;  %216 = vrot.lane.b32.xlu0 %v1072_v1, %s997_s25 }
  0x4b   :  { %222 = vrot.lane.b32.xlu1 %v1078_v2, %s997_s25  ;;  %220 = vrot.lane.b32.xlu0 %v1070_v0, %s997_s25 }
  0x4f   :  { %256 = vrot.lane.b32.xlu1 %v1080_v3, %s998_s26  ;;  %254 = vrot.lane.b32.xlu0 %v1072_v1, %s998_s26 }
  0x53   :  { %260 = vrot.lane.b32.xlu1 %v1078_v2, %s998_s26  ;;  %258 = vrot.lane.b32.xlu0 %v1070_v0, %s998_s26 }
  0x57   :  { %294 = vrot.lane.b32.xlu1 %v1080_v3, %s999_s27  ;;  %292 = vrot.lane.b32.xlu0 %v1072_v1, %s999_s27 }
  0x5b   :  { %298 = vrot.lane.b32.xlu1 %v1078_v2, %s999_s27  ;;  %296 = vrot.lane.b32.xlu0 %v1070_v0, %s999_s27 }
  0x5f   :  { %332 = vrot.lane.b32.xlu1 %v1080_v3, %s1002_s28  ;;  %330 = vrot.lane.b32.xlu0 %v1072_v1, %s1002_s28 }
  0x63   :  { %336 = vrot.lane.b32.xlu1 %v1078_v2, %s1002_s28  ;;  %334 = vrot.lane.b32.xlu0 %v1070_v0, %s1002_s28 }
  0x67   :  { %372 = vperm.xlu0 %916, %v369_v6  }
  0x99   :  { %v67_v9 = vpop.permute.xlu1 %66  ;;  %v63_v10 = vpop.permute.xlu0 %62 }
  0x9d   :  { %v69_v16 = vpop.permute.xlu1 %68  ;;  %v65_v18 = vpop.permute.xlu0 %64 }
  0x9e   :  { %v75_v22 = vsel %vm72_vm0, %v63_v10, %v65_v18  ;;  %v76_v28 = vsel %vm72_vm0, %v69_v16, %v63_v10  ;;  %v74_v32 = vsel %vm72_vm0, %v65_v18, %v67_v9  ;;  %v73_v36 = vsel %vm72_vm0, %v67_v9, %v69_v16 }
  0x9f   :  { %v99_v33 = vmul.f32 %v1160_v20, %v75_v22  ;;  %v98_v37 = vmul.f32 %v1168_v23, %v76_v28  ;;  %v100_v41 = vmul.f32 %v1171_v24, %v74_v32  ;;  %v101_v47 = vmul.f32 %v1184_v31, %v73_v36 }
  0xa0   :  { %v1231_v9 = vrot.slane %v57_v55, %v1152_v15  ;;  %v1234_v10 = vrot.slane %v57_v55, %v1154_v17  ;;  %v1241_v18 = vrot.slane %v57_v55, %v1156_v19 }
  0xa1   :  { %v105_v25 = vpop.permute.xlu1 %104  ;;  %v103_v26 = vpop.permute.xlu0 %102 }
  0xa2   :  { %v113_v29 = vsel %vm110_vm1, %v103_v26, %v105_v25 }
  0xa3   :  { %v137_v34 = vmul.f32 %v1163_v21, %v113_v29 }
  0xa5   :  { %v109_v38 = vpop.permute.xlu1 %108  ;;  %v107_v39 = vpop.permute.xlu0 %106  ;;  %v837_v40 = vpack.c.bf16 %v137_v34, %v99_v33 }
  0xa6   :  { %v114_v42 = vsel %vm110_vm1, %v109_v38, %v103_v26  ;;  %v111_v43 = vsel %vm110_vm1, %v107_v39, %v109_v38  ;;  %v112_v44 = vsel %vm110_vm1, %v105_v25, %v107_v39 }
  0xa7   :  { %v136_v45 = vmul.f32 %v1174_v27, %v114_v42  ;;  %v138_v46 = vmul.f32 %v1181_v30, %v112_v44  ;;  %838 = vmatprep.subr.bf16.mxu0 %v837_v40  ;;  %v139_v48 = vmul.f32 %v1191_v35, %v111_v43 }
  0xa9   :  { %v143_v49 = vpop.permute.xlu1 %142  ;;  %v141_v50 = vpop.permute.xlu0 %140  ;;  %v839_v51 = vpack.c.bf16 %v136_v45, %v98_v37  ;;  %v853_v52 = vpack.c.bf16 %v139_v48, %v101_v47  ;;  %v855_v53 = vpack.c.bf16 %v138_v46, %v100_v41  ;;  %v58_v41 = vld [vmem:[#allocation5 + $0x14] sm:$0xf] }
  0xaa   :  { %v151_v60 = vsel %vm148_vm2, %v141_v50, %v143_v49  ;;  %v1259_v47 = vrot.slane %v58_v41, %v1152_v15  ;;  %v1262_v48 = vrot.slane %v58_v41, %v1156_v19 }
  0xab   :  { %840 = vmatpush1.bf16.msra.mxu0 %v839_v51  ;;  %854 = vmatprep.subr.bf16.mxu1 %v853_v52  ;;  %v175_v13 = vmul.f32 %v1209_v58, %v151_v60  ;;  %v1270_v51 = vrot.slane %v58_v41, %v1154_v17 }
  0xac   :  { %856 = vmatpush1.bf16.msra.mxu1 %v855_v53 }
  0xad   :  { %v147_v56 = vpop.permute.xlu1 %146  ;;  %v145_v57 = vpop.permute.xlu0 %144 }
  0xae   :  { %v152_v7 = vsel %vm148_vm2, %v147_v56, %v141_v50  ;;  %v150_v14 = vsel %vm148_vm2, %v143_v49, %v145_v57  ;;  %v149_v22 = vsel %vm148_vm2, %v145_v57, %v147_v56  ;;  %v1267_v50 = vrot.slane %v58_v41, %v1149_v12 }
  0xaf   :  { %v174_v25 = vmul.f32 %v1218_v61, %v152_v7  ;;  %v176_v32 = vmul.f32 %v1221_v62, %v150_v14  ;;  %v177_v37 = vmul.f32 %v1224_v63, %v149_v22 }
  0xb1   :  { %v181_v5 = vpop.permute.xlu1 %180  ;;  %v179_v6 = vpop.permute.xlu0 %178 }
  0xb2   :  { %v189_v8 = vsel %vm186_vm3, %v179_v6, %v181_v5 }
  0xb3   :  { %v213_v16 = vmul.f32 %v1213_v59, %v189_v8 }
  0xb5   :  { %v185_v26 = vpop.permute.xlu1 %184  ;;  %v183_v28 = vpop.permute.xlu0 %182  ;;  %v841_v29 = vpack.c.bf16 %v213_v16, %v175_v13 }
  0xb6   :  { %v190_v33 = vsel %vm186_vm3, %v185_v26, %v179_v6  ;;  %v187_v34 = vsel %vm186_vm3, %v183_v28, %v185_v26  ;;  %v188_v36 = vsel %vm186_vm3, %v181_v5, %v183_v28  ;;  %v60_v28 = vld [vmem:[#allocation5 + $0x1c] sm:$0xf] }
  0xb7   :  { %v212_v38 = vmul.f32 %v1231_v9, %v190_v33  ;;  %v214_v39 = vmul.f32 %v1234_v10, %v188_v36  ;;  %v215_v40 = vmul.f32 %v1241_v18, %v187_v34  ;;  %842 = vmatprep.subr.bf16.mxu0 %v841_v29  ;;  %v59_v29 = vld [vmem:[#allocation5 + $0x18] sm:$0xf] }
  0xb8   :  { %v1292_v33 = vrot.slane %v59_v29, %v1149_v12 }
  0xb9   :  { %v219_v42 = vpop.permute.xlu1 %218  ;;  %v217_v43 = vpop.permute.xlu0 %216  ;;  %v843_v44 = vpack.c.bf16 %v212_v38, %v174_v25  ;;  %v857_v45 = vpack.c.bf16 %v215_v40, %v177_v37  ;;  %v859_v46 = vpack.c.bf16 %v214_v39, %v176_v32  ;;  %v1289_v32 = vrot.slane %v59_v29, %v1156_v19 }
  0xba   :  { %v227_v49 = vsel %vm224_vm4, %v217_v43, %v219_v42  ;;  %v1297_v38 = vrot.slane %v59_v29, %v1154_v17  ;;  %v1302_v40 = vrot.slane %v60_v28, %v1152_v15 }
  0xbb   :  { %844 = vmatpush1.bf16.msra.mxu0 %v843_v44  ;;  %858 = vmatprep.subr.bf16.mxu1 %v857_v45  ;;  %v250_v54 = vmul.f32 %v1259_v47, %v227_v49  ;;  %v1313_v44 = vrot.slane %v60_v28, %v1154_v17  ;;  %v1316_v45 = vrot.slane %v59_v29, %v1152_v15 }
  0xbc   :  { %860 = vmatpush1.bf16.msra.mxu1 %v859_v46 }
  0xbd   :  { %v223_v52 = vpop.permute.xlu1 %222  ;;  %v221_v53 = vpop.permute.xlu0 %220  ;;  %v847_v22 = vpack.c.bf16 %v250_v54, %v1072_v1 }
  0xbe   :  { %v228_v55 = vsel %vm224_vm4, %v223_v52, %v217_v43  ;;  %v225_v56 = vsel %vm224_vm4, %v221_v53, %v223_v52  ;;  %v226_v57 = vsel %vm224_vm4, %v219_v42, %v221_v53  ;;  %v1307_v42 = vrot.slane %v60_v28, %v1156_v19 }
  0xbf   :  { %v253_v60 = vmul.f32 %v1262_v48, %v228_v55  ;;  %v251_v5 = vmul.f32 %v1267_v50, %v226_v57  ;;  %v252_v6 = vmul.f32 %v1270_v51, %v225_v56  ;;  %v1310_v43 = vrot.slane %v60_v28, %v1149_v12 }
  0xc1   :  { %v257_v7 = vpop.permute.xlu1 %256  ;;  %v255_v8 = vpop.permute.xlu0 %254  ;;  %v845_v13 = vpack.c.bf16 %v251_v5, %v1080_v3  ;;  %v861_v14 = vpack.c.bf16 %v253_v60, %v1078_v2  ;;  %v863_v16 = vpack.c.bf16 %v252_v6, %v1070_v0 }
  0xc2   :  { %v265_v49 = vsel %vm262_vm6, %v255_v8, %v257_v7 }
  0xc3   :  { %846 = vmatprep.subr.bf16.mxu0 %v845_v13  ;;  %862 = vmatprep.subr.bf16.mxu1 %v861_v14  ;;  %v288_v14 = vmul.f32 %v1316_v45, %v265_v49 }
  0xc4   :  { %848 = vmatpush1.bf16.msra.mxu0 %v847_v22  ;;  %864 = vmatpush1.bf16.msra.mxu1 %v863_v16  ;;  %v61_v22 = vld [vmem:[#allocation5 + $0x20] sm:$0xf] }
  0xc5   :  { %v261_v25 = vpop.permute.xlu1 %260  ;;  %v259_v26 = vpop.permute.xlu0 %258 }
  0xc6   :  { %v266_v37 = vsel %vm262_vm6, %v261_v25, %v255_v8  ;;  %v264_v39 = vsel %vm262_vm6, %v257_v7, %v259_v26  ;;  %v263_v46 = vsel %vm262_vm6, %v259_v26, %v261_v25 }
  0xc7   :  { %v291_v52 = vmul.f32 %v1289_v32, %v266_v37  ;;  %v289_v53 = vmul.f32 %v1292_v33, %v264_v39  ;;  %v290_v6 = vmul.f32 %v1297_v38, %v263_v46  ;;  %v1341_v37 = vrot.slane %v61_v22, %v1149_v12 }
  0xc8   :  { %v1344_v39 = vrot.slane %v61_v22, %v1154_v17 }
  0xc9   :  { %v295_v34 = vpop.permute.xlu1 %294  ;;  %v293_v36 = vpop.permute.xlu0 %292 }
  0xca   :  { %v303_v41 = vsel %vm300_vm5, %v293_v36, %v295_v34 }
  0xcb   :  { %v326_v56 = vmul.f32 %v1302_v40, %v303_v41  ;;  %v1347_v41 = vrot.slane %v61_v22, %v1152_v15 }
  0xcd   :  { %v299_v54 = vpop.permute.xlu1 %298  ;;  %v297_v55 = vpop.permute.xlu0 %296 }
  0xce   :  { %v304_v57 = vsel %vm300_vm5, %v299_v54, %v293_v36  ;;  %v301_v60 = vsel %vm300_vm5, %v297_v55, %v299_v54  ;;  %v302_v5 = vsel %vm300_vm5, %v295_v34, %v297_v55  ;;  %v851_v36 = vpack.c.bf16 %v326_v56, %v288_v14  ;;  %v368_v56 = vld [vmem:[%s1566_s2] sm:$0xff] }
  0xcf   :  { %v329_v7 = vmul.f32 %v1307_v42, %v304_v57  ;;  %v327_v8 = vmul.f32 %v1310_v43, %v302_v5  ;;  %v328_v13 = vmul.f32 %v1313_v44, %v301_v60  ;;  %v1338_v34 = vrot.slane %v61_v22, %v1156_v19 }
  0xd1   :  { %v333_v16 = vpop.permute.xlu1 %332  ;;  %v331_v25 = vpop.permute.xlu0 %330  ;;  %v849_v26 = vpack.c.bf16 %v327_v8, %v289_v53  ;;  %v865_v28 = vpack.c.bf16 %v329_v7, %v291_v52  ;;  %v867_v29 = vpack.c.bf16 %v328_v13, %v290_v6 }
  0xd2   :  { %v341_v46 = vsel %vm338_vm7, %v331_v25, %v333_v16 }
  0xd3   :  { %850 = vmatprep.subr.bf16.mxu0 %v849_v26  ;;  %866 = vmatprep.subr.bf16.mxu1 %v865_v28  ;;  %v364_v55 = vmul.f32 %v1347_v41, %v341_v46  ;;  %v654_v28 = vld [vmem:[%s1569_s5] sm:$0xff] }
  0xd4   :  { %852 = vmatpush1.bf16.msra.mxu0 %v851_v36  ;;  %868 = vmatpush1.bf16.msra.mxu1 %v867_v29 }
  0xd5   :  { %v337_v49 = vpop.permute.xlu1 %336  ;;  %v335_v52 = vpop.permute.xlu0 %334 }
  0xd6   :  { %v342_v19 = vsel %vm338_vm7, %v337_v49, %v331_v25  ;;  %v339_v12 = vsel %vm338_vm7, %v335_v52, %v337_v49  ;;  %v340_v17 = vsel %vm338_vm7, %v333_v16, %v335_v52 }
  0xd7   :  { %v367_v53 = vmul.f32 %v1338_v34, %v342_v19  ;;  %v365_v15 = vmul.f32 %v1341_v37, %v340_v17  ;;  %v366_v54 = vmul.f32 %v1344_v39, %v339_v12 }
  0xd9   :  { %395 = vmatprep.subr.mxu0 %v365_v15  ;;  %466 = vmatprep.subr.mxu1 %v367_v53 }
  0xda   :  { %396 = vmatpush1.msra.mxu0 %v364_v55  ;;  %467 = vmatpush1.msra.mxu1 %v366_v54 }
  0xdb   :  { %833 = vmatmul.mubr.msk.f32.vlgmr.msra.gmra.mrb[0].mxu0 %vm375_vm8, %v368_v56  ;;  %834 = vmatmul.mubr.msk.f32.vlgmr.msra.gmra.mrb[0].mxu1 %vm375_vm8, %v368_v56 }
  0xdc   :  { %727 = vmatprep.mubr.f32.mxu0 %v1000_v4  ;;  %798 = vmatprep.mubr.f32.mxu1 %v1000_v4 }
  0xe6   :  { %v373_v57 = vpop.permute.xlu0 %372 }
 0x1ae   :  { %v445_v60 = vpop.f32.mrb[0].mxu0  ;;  %v516_v5 = vpop.f32.mrb[0].mxu1 }
 0x1af   :  { %v446_v6 = vadd.f32 %v445_v60, %v373_v57  ;;  %v517_v7 = vadd.f32 %v516_v5, %v373_v57  ;;  %v447_v8 = vpop.f32.mrb[1].mxu0  ;;  %v518_v13 = vpop.f32.mrb[1].mxu1 }
 0x1b0   :  { %v448_v22 = vadd.f32 %v447_v8, %v373_v57  ;;  %v519_v4 = vadd.f32 %v518_v13, %v373_v57 }
 0x1b1   :  { %v1368_v14 = vmax.f32 %v446_v6, 0.0  ;;  %v1370_v16 = vmax.f32 %v517_v7, 0.0 }
 0x1b2   :  { %v1376_v25 = vmax.f32 %v448_v22, 0.0  ;;  %v1382_v26 = vmax.f32 %v519_v4, 0.0 }
 0x1b3   :  { %529 = vrot.lane.b32.xlu0 %v1370_v16, %s993_s22  ;;  %525 = vrot.lane.b32.xlu1 %v1368_v14, %s993_s22 }
 0x1b7   :  { %541 = vrot.lane.b32.xlu0 %v1368_v14, %s994_s1  ;;  %527 = vrot.lane.b32.xlu1 %v1376_v25, %s993_s22 }
 0x1bb   :  { %545 = vrot.lane.b32.xlu0 %v1370_v16, %s994_s1  ;;  %531 = vrot.lane.b32.xlu1 %v1382_v26, %s993_s22 }
 0x1bf   :  { %557 = vrot.lane.b32.xlu0 %v1368_v14, %s995_s23  ;;  %543 = vrot.lane.b32.xlu1 %v1376_v25, %s994_s1 }
 0x1c3   :  { %561 = vrot.lane.b32.xlu0 %v1370_v16, %s995_s23  ;;  %547 = vrot.lane.b32.xlu1 %v1382_v26, %s994_s1 }
 0x1c7   :  { %573 = vrot.lane.b32.xlu0 %v1368_v14, %s996_s24  ;;  %559 = vrot.lane.b32.xlu1 %v1376_v25, %s995_s23 }
 0x1cb   :  { %577 = vrot.lane.b32.xlu0 %v1370_v16, %s996_s24  ;;  %563 = vrot.lane.b32.xlu1 %v1382_v26, %s995_s23 }
 0x1cf   :  { %589 = vrot.lane.b32.xlu0 %v1368_v14, %s997_s25  ;;  %575 = vrot.lane.b32.xlu1 %v1376_v25, %s996_s24 }
 0x1d3   :  { %593 = vrot.lane.b32.xlu0 %v1370_v16, %s997_s25  ;;  %579 = vrot.lane.b32.xlu1 %v1382_v26, %s996_s24 }
 0x1d7   :  { %605 = vrot.lane.b32.xlu0 %v1368_v14, %s998_s26  ;;  %591 = vrot.lane.b32.xlu1 %v1376_v25, %s997_s25 }
 0x1db   :  { %609 = vrot.lane.b32.xlu0 %v1370_v16, %s998_s26  ;;  %595 = vrot.lane.b32.xlu1 %v1382_v26, %s997_s25 }
 0x1df   :  { %621 = vrot.lane.b32.xlu0 %v1368_v14, %s999_s27  ;;  %607 = vrot.lane.b32.xlu1 %v1376_v25, %s998_s26 }
 0x1e3   :  { %625 = vrot.lane.b32.xlu0 %v1370_v16, %s999_s27  ;;  %611 = vrot.lane.b32.xlu1 %v1382_v26, %s998_s26 }
 0x1e7   :  { %637 = vrot.lane.b32.xlu0 %v1368_v14, %s1002_s28  ;;  %623 = vrot.lane.b32.xlu1 %v1376_v25, %s999_s27 }
 0x1eb   :  { %641 = vrot.lane.b32.xlu0 %v1370_v16, %s1002_s28  ;;  %627 = vrot.lane.b32.xlu1 %v1382_v26, %s999_s27 }
 0x1ef   :  { %657 = vperm.xlu0 %916, %v654_v28   ;;  %639 = vrot.lane.b32.xlu1 %v1376_v25, %s1002_s28 }
 0x1f3   :  { %643 = vrot.lane.b32.xlu1 %v1382_v26, %s1002_s28 }
 0x225   :  { %v530_v29 = vpop.permute.xlu0 %529  ;;  %v526_v36 = vpop.permute.xlu1 %525 }
 0x229   :  { %v542_v46 = vpop.permute.xlu0 %541  ;;  %v528_v49 = vpop.permute.xlu1 %527 }
 0x22a   :  { %v535_v12 = vsel %vm72_vm0, %v526_v36, %v528_v49  ;;  %v534_v5 = vsel %vm72_vm0, %v528_v49, %v530_v29 }
 0x22b   :  { %v538_v54 = vmul.f32 %v535_v12, %v1160_v20 }
 0x22d   :  { %v546_v52 = vpop.permute.xlu0 %545  ;;  %v532_v19 = vpop.permute.xlu1 %531 }
 0x22e   :  { %v533_v57 = vsel %vm72_vm0, %v530_v29, %v532_v19  ;;  %v536_v60 = vsel %vm72_vm0, %v532_v19, %v526_v36  ;;  %v539_v29 = vmul.f32 %v534_v5, %v1171_v24 }
 0x22f   :  { %v537_v22 = vmul.f32 %v536_v60, %v1168_v23  ;;  %v540_v4 = vmul.f32 %v533_v57, %v1184_v31 }
 0x231   :  { %v558_v17 = vpop.permute.xlu0 %557  ;;  %v544_v53 = vpop.permute.xlu1 %543 }
 0x232   :  { %v551_v15 = vsel %vm110_vm1, %v542_v46, %v544_v53  ;;  %v550_v55 = vsel %vm110_vm1, %v544_v53, %v546_v52 }
 0x233   :  { %v554_v56 = vmul.f32 %v551_v15, %v1163_v21  ;;  %v555_v13 = vmul.f32 %v550_v55, %v1181_v30 }
 0x235   :  { %v562_v6 = vpop.permute.xlu0 %561  ;;  %v548_v7 = vpop.permute.xlu1 %547  ;;  %v869_v8 = vpack.c.bf16 %v554_v56, %v538_v54  ;;  %v887_v53 = vpack.c.bf16 %v555_v13, %v539_v29 }
 0x236   :  { %v549_v20 = vsel %vm110_vm1, %v546_v52, %v548_v7  ;;  %v552_v21 = vsel %vm110_vm1, %v548_v7, %v542_v46 }
 0x237   :  { %v553_v28 = vmul.f32 %v552_v21, %v1174_v27  ;;  %v556_v36 = vmul.f32 %v549_v20, %v1191_v35  ;;  %870 = vmatprep.subr.bf16.mxu0 %v869_v8 }
 0x239   :  { %v871_v49 = vpack.c.bf16 %v553_v28, %v537_v22  ;;  %v574_v19 = vpop.permute.xlu0 %573  ;;  %v560_v30 = vpop.permute.xlu1 %559  ;;  %v885_v12 = vpack.c.bf16 %v556_v36, %v540_v4 }
 0x23a   :  { %v567_v23 = vsel %vm148_vm2, %v558_v17, %v560_v30  ;;  %v566_v57 = vsel %vm148_vm2, %v560_v30, %v562_v6 }
 0x23b   :  { %872 = vmatpush1.bf16.msra.mxu0 %v871_v49  ;;  %886 = vmatprep.subr.bf16.mxu1 %v885_v12  ;;  %v570_v24 = vmul.f32 %v567_v23, %v1209_v58 }
 0x23c   :  { %888 = vmatpush1.bf16.msra.mxu1 %v887_v53 }
 0x23d   :  { %v578_v46 = vpop.permute.xlu0 %577  ;;  %v564_v52 = vpop.permute.xlu1 %563 }
 0x23e   :  { %v565_v55 = vsel %vm148_vm2, %v562_v6, %v564_v52  ;;  %v568_v56 = vsel %vm148_vm2, %v564_v52, %v558_v17  ;;  %v571_v6 = vmul.f32 %v566_v57, %v1221_v62 }
 0x23f   :  { %v569_v13 = vmul.f32 %v568_v56, %v1218_v61  ;;  %v572_v20 = vmul.f32 %v565_v55, %v1224_v63 }
 0x241   :  { %v590_v31 = vpop.permute.xlu0 %589  ;;  %v576_v27 = vpop.permute.xlu1 %575 }
 0x242   :  { %v583_v35 = vsel %vm186_vm3, %v574_v19, %v576_v27  ;;  %v582_v15 = vsel %vm186_vm3, %v576_v27, %v578_v46 }
 0x243   :  { %v586_v54 = vmul.f32 %v583_v35, %v1213_v59  ;;  %v587_v8 = vmul.f32 %v582_v15, %v1234_v10 }
 0x245   :  { %v594_v60 = vpop.permute.xlu0 %593  ;;  %v580_v5 = vpop.permute.xlu1 %579  ;;  %v873_v7 = vpack.c.bf16 %v586_v54, %v570_v24  ;;  %v891_v36 = vpack.c.bf16 %v587_v8, %v571_v6 }
 0x246   :  { %v581_v58 = vsel %vm186_vm3, %v578_v46, %v580_v5  ;;  %v584_v59 = vsel %vm186_vm3, %v580_v5, %v574_v19 }
 0x247   :  { %v585_v17 = vmul.f32 %v584_v59, %v1231_v9  ;;  %v588_v21 = vmul.f32 %v581_v58, %v1241_v18  ;;  %874 = vmatprep.subr.bf16.mxu0 %v873_v7 }
 0x249   :  { %v875_v22 = vpack.c.bf16 %v585_v17, %v569_v13  ;;  %v606_v4 = vpop.permute.xlu0 %605  ;;  %v592_v10 = vpop.permute.xlu1 %591  ;;  %v889_v28 = vpack.c.bf16 %v588_v21, %v572_v20 }
 0x24a   :  { %v598_v29 = vsel %vm224_vm4, %v592_v10, %v594_v60  ;;  %v599_v61 = vsel %vm224_vm4, %v590_v31, %v592_v10 }
 0x24b   :  { %v601_v63 = vmul.f32 %v599_v61, %v1259_v47  ;;  %v602_v9 = vmul.f32 %v598_v29, %v1267_v50  ;;  %876 = vmatpush1.bf16.msra.mxu0 %v875_v22  ;;  %890 = vmatprep.subr.bf16.mxu1 %v889_v28 }
 0x24c   :  { %892 = vmatpush1.bf16.msra.mxu1 %v891_v36 }
 0x24d   :  { %v879_v62 = vpack.c.bf16 %v601_v63, %v1368_v14  ;;  %v610_v18 = vpop.permute.xlu0 %609  ;;  %v596_v49 = vpop.permute.xlu1 %595  ;;  %v877_v19 = vpack.c.bf16 %v602_v9, %v1376_v25 }
 0x24e   :  { %v597_v30 = vsel %vm224_vm4, %v594_v60, %v596_v49  ;;  %v600_v12 = vsel %vm224_vm4, %v596_v49, %v590_v31 }
 0x24f   :  { %v603_v53 = vmul.f32 %v597_v30, %v1270_v51  ;;  %v604_v47 = vmul.f32 %v600_v12, %v1262_v48  ;;  %878 = vmatprep.subr.bf16.mxu0 %v877_v19 }
 0x250   :  { %880 = vmatpush1.bf16.msra.mxu0 %v879_v62 }
 0x251   :  { %v895_v50 = vpack.c.bf16 %v603_v53, %v1370_v16  ;;  %v622_v46 = vpop.permute.xlu0 %621  ;;  %v608_v14 = vpop.permute.xlu1 %607  ;;  %v893_v52 = vpack.c.bf16 %v604_v47, %v1382_v26 }
 0x252   :  { %v614_v27 = vsel %vm262_vm6, %v608_v14, %v610_v18  ;;  %v615_v51 = vsel %vm262_vm6, %v606_v4, %v608_v14 }
 0x253   :  { %894 = vmatprep.subr.bf16.mxu1 %v893_v52  ;;  %v617_v35 = vmul.f32 %v615_v51, %v1316_v45  ;;  %v618_v26 = vmul.f32 %v614_v27, %v1292_v33 }
 0x254   :  { %896 = vmatpush1.bf16.msra.mxu1 %v895_v50 }
 0x255   :  { %v626_v25 = vpop.permute.xlu0 %625  ;;  %v612_v23 = vpop.permute.xlu1 %611 }
 0x256   :  { %v613_v55 = vsel %vm262_vm6, %v610_v18, %v612_v23  ;;  %v616_v56 = vsel %vm262_vm6, %v612_v23, %v606_v4 }
 0x257   :  { %v619_v45 = vmul.f32 %v613_v55, %v1297_v38 }
 0x259   :  { %v624_v31 = vpop.permute.xlu1 %623  ;;  %v638_v24 = vpop.permute.xlu0 %637 }
 0x25a   :  { %v630_v48 = vsel %vm300_vm5, %v624_v31, %v626_v25  ;;  %v631_v16 = vsel %vm300_vm5, %v622_v46, %v624_v31 }
 0x25b   :  { %v633_v15 = vmul.f32 %v631_v16, %v1302_v40  ;;  %v634_v54 = vmul.f32 %v630_v48, %v1310_v43  ;;  %v620_v40 = vmul.f32 %v616_v56, %v1289_v32 }
 0x25d   :  { %v883_v57 = vpack.c.bf16 %v633_v15, %v617_v35  ;;  %v628_v60 = vpop.permute.xlu1 %627  ;;  %v881_v5 = vpack.c.bf16 %v634_v54, %v618_v26  ;;  %v642_v58 = vpop.permute.xlu0 %641 }
 0x25e   :  { %v629_v7 = vsel %vm300_vm5, %v626_v25, %v628_v60  ;;  %v632_v33 = vsel %vm300_vm5, %v628_v60, %v622_v46 }
 0x25f   :  { %v635_v43 = vmul.f32 %v629_v7, %v1313_v44  ;;  %v636_v8 = vmul.f32 %v632_v33, %v1307_v42  ;;  %882 = vmatprep.subr.bf16.mxu0 %v881_v5  ;;  %v653_v42 = vld [vmem:[%s1568_s4] sm:$0xff]  ;;  %s1003_s4 = smov [#allocation7]  }
 0x260   :  { %884 = vmatpush1.bf16.msra.mxu0 %v883_v57  ;;  %s823_s10 = sshll.u32 %s1003_s4, 4  ;;  %s824_s10 = int_to_ptr.vmem [resolvable:$true] %s823_s10 }
 0x261   :  { %v899_v59 = vpack.c.bf16 %v635_v43, %v619_v45  ;;  %v640_v13 = vpop.permute.xlu1 %639  ;;  %v897_v20 = vpack.c.bf16 %v636_v8, %v620_v40  ;;  %s961_s11 = scalar_lea.vmem %s824_s10, 512  ;;  %p966_p3 = scmp.lt.s32.totalorder %s824_s10, %s824_s10 }
 0x262   :  { %v646_v17 = vsel %vm338_vm7, %v640_v13, %v642_v58  ;;  %v647_v21 = vsel %vm338_vm7, %v638_v24, %v640_v13  ;;  %p962_p2 = scmp.ne.s32.totalorder %s824_s10, %s961_s11  ;;  %p967_p4 = scmp.lt.s32.totalorder %s961_s11, %s961_s11 }
 0x263   :  { %v649_v38 = vmul.f32 %v647_v21, %v1347_v41  ;;  %v650_v32 = vmul.f32 %v646_v17, %v1341_v37  ;;  %898 = vmatprep.subr.bf16.mxu1 %v897_v20 }
 0x264   :  { %900 = vmatpush1.bf16.msra.mxu1 %v899_v59  ;;  %p968_p5 = por %p967_p4, %p966_p3 }
 0x265   :  { %679 = vmatprep.subr.mxu0 %v650_v32  ;;  %v644_v44 = vpop.permute.xlu1 %643 }
 0x266   :  { %v645_v6 = vsel %vm338_vm7, %v642_v58, %v644_v44  ;;  %v648_v22 = vsel %vm338_vm7, %v644_v44, %v638_v24  ;;  %680 = vmatpush1.msra.mxu0 %v649_v38  ;;  %p969_p6 = pnand %p968_p5, %p962_p2 }
 0x267   :  { %v651_v4 = vmul.f32 %v645_v6, %v1344_v39  ;;  %v652_v41 = vmul.f32 %v648_v22, %v1338_v34  ;;  %835 = vmatmul.mubr.msk.f32.vlgmr.msra.gmra.mrb[2].mxu0 %vm375_vm8, %v653_v42 }
 0x269   :  { %750 = vmatprep.subr.mxu1 %v652_v41 }
 0x26a   :  { %751 = vmatpush1.msra.mxu1 %v651_v4 }
 0x26b   :  { %836 = vmatmul.mubr.msk.f32.vlgmr.msra.gmra.mrb[2].mxu1 %vm375_vm8, %v653_v42 }
 0x26e   :  { %v658_v37 = vpop.permute.xlu0 %657 }
 0x33a   :  { %v729_v10 = vpop.f32.mrb[2].mxu0 }
 0x33b   :  { %v730_v28 = vadd.f32 %v729_v10, %v658_v37  ;;  %v731_v36 = vpop.f32.mrb[3].mxu0 }
 0x33c   :  { %v732_v29 = vadd.f32 %v731_v36, %v658_v37 }
 0x33d   :  { %v805_v61 = vadd.f32 %v730_v28, %v1072_v1 }
 0x33e   :  { %v806_v11 = vadd.f32 %v732_v29, %v1080_v3  ;;  %v800_v63 = vpop.f32.mrb[2].mxu1 }
 0x33f   :  { %v809_v9 = vmax.f32 %v805_v61, 0.0  ;;  %v801_v39 = vadd.f32 %v800_v63, %v658_v37  ;;  %v802_v62 = vpop.f32.mrb[3].mxu1 }
 0x340   :  { %v810_v34 = vmax.f32 %v806_v11, 0.0  ;;  %v803_v18 = vadd.f32 %v802_v62, %v658_v37 }
 0x341   :  { %813 = vst [vmem:[#allocation7] sm:$0xff] %v809_v9  ;;  %v807_v49 = vadd.f32 %v801_v39, %v1070_v0 }
 0x342   :  { %814 = vst [vmem:[#allocation7 + $0x8] sm:$0xff] %v810_v34  ;;  %v808_v19 = vadd.f32 %v803_v18, %v1078_v2 }
 0x343   :  { %v811_v30 = vmax.f32 %v807_v49, 0.0 }
 0x344   :  { %v812_v12 = vmax.f32 %v808_v19, 0.0 }
 0x345   :  { %815 = vst [vmem:[#allocation7 + $0x10] sm:$0xff] %v811_v30 }
 0x346   :  { %816 = vst [vmem:[#allocation7 + $0x18] sm:$0xff] %v812_v12 }
 0x347   :  { %972 = shalt.err (!%p969_p6)
}
 0x348   :  { %s973_s14 = scalar_lea.hbm %s1570_s6, 512 }
 0x349   :  { %p974_p7 = scmp.ne.s32.totalorder %s1570_s6, %s973_s14  ;;  %p977_p8 = scmp.lt.u32.totalorder %s973_s14, %s1570_s6 }
 0x34b   :  { %p979_p9 = pnand %p977_p8, %p974_p7 }
 0x34d   :  { %982 = shalt.err (!%p979_p9)
}
 0x34e   :  { %826 = dma.vmem_to_hbm [thread:$0]  %s824_s10, 512, %s1570_s6, [#allocation4]  }
 0x34f   :  { %987 = dma.done.wait [#allocation4], 512  }
 0x350   :  { %988 = vsyncadd [#allocation4], 4294966784 }
 0x351   :  { %830 = vsyncpa [#allocation3], 1 }
 0x352   :  { %831 = vsyncpa [#allocation6], 1 }
 0x353   :  { %832 = vsyncpa [#allocation4], 1 }

</bundles_post_ra>
